<compile_context>
chip_gen: v6e
topology: v6e:2x2x1
jax: 0.10.0
libtpu: 0.0.40
codegen_flags: <defaults>
</compile_context>

<pallas_src>
import functools

import jax
import jax.numpy as jnp
from jax.experimental import pallas as pl
from jax.experimental.pallas import tpu as pltpu

_LANES = 128
_TARGET_BLOCK_BYTES = 1 * 1024 * 1024   # ~1 MiB per input block
_VMEM_LIMIT_BYTES = 32 * 1024 * 1024    # safe on v5e/v6e (128 MiB) and v7x (64 MiB)


def _cdiv(a, b):
    return (a + b - 1) // b


def _round_up(a, b):
    return _cdiv(a, b) * b


def _sublane_multiple(dtype):
    # f32 -> 8, bf16/f16 -> 16, int8/fp8 -> 32 (sublane packing).
    return {4: 8, 2: 16, 1: 32}.get(jnp.dtype(dtype).itemsize, 8)


def _kld_kernel(valid_rows, block_rows, blocks_per_part, needs_mask,
                mean_ref, logvar_ref, out_ref, acc_ref):
    part = pl.program_id(0)   # "parallel" axis (megacore split on multi-TC chips)
    step = pl.program_id(1)   # "arbitrary" reduction axis

    @pl.when(step == 0)
    def _():
        acc_ref[...] = jnp.zeros_like(acc_ref)

    m = mean_ref[...].astype(jnp.float32)
    lv = logvar_ref[...].astype(jnp.float32)
    term = 1.0 + lv - m * m - jnp.exp(lv)

    if needs_mask:
        # Unclamped logical block index for this step.
        blk = part * blocks_per_part + step
        # Full interior blocks skip masking entirely (hot path).
        block_is_full = (blk + 1) * block_rows <= valid_rows

        @pl.when(block_is_full)
        def _():
            acc_ref[...] += term

        @pl.when(jnp.logical_not(block_is_full))
        def _():
            # Partial tail block, or a duplicated (clamped) block: zero the
            # rows that lie past the valid region. Cheap VPU compare+select,
            # executed only on the (at most couple of) ragged steps.
            row0 = blk * block_rows
            row_ids = row0 + jax.lax.broadcasted_iota(jnp.int32, term.shape, 0)
            acc_ref[...] += jnp.where(row_ids < valid_rows, term, 0.0)
    else:
        acc_ref[...] += term

    @pl.when(step == pl.num_programs(1) - 1)
    def _():
        # One cross-sublane reduce per part -> lane-dense (1, 128) partial sum.
        out_ref[...] = jnp.sum(acc_ref[...], axis=0, keepdims=True)


def kld(mean, log_var, *, target_block_bytes=_TARGET_BLOCK_BYTES, num_parts=2):
    """Pallas-TPU implementation of KLD.forward (returns a scalar f32)."""
    assert mean.shape == log_var.shape
    n = mean.size
    assert n > 0

    sub = max(_sublane_multiple(mean.dtype), _sublane_multiple(log_var.dtype))
    itemsize = max(jnp.dtype(mean.dtype).itemsize, jnp.dtype(log_var.dtype).itemsize)
    max_block_rows = max(sub, (target_block_bytes // (_LANES * itemsize)) // sub * sub)

    rows = _cdiv(n, _LANES)
    block_rows = min(max_block_rows, _round_up(rows, sub))
    rows_padded = max(rows, block_rows)      # block never exceeds the array
    padded_n = rows_padded * _LANES

    def _prep(x):
        x = x.reshape(-1)
        if padded_n != n:
            # Zero padding is exact for this formula: 1 + 0 - 0 - exp(0) == 0.
            # Only pads up to a 128-lane multiple (or one block for tiny inputs).
            x = jnp.pad(x, (0, padded_n - n))
        return x.reshape(rows_padded, _LANES)

    mean2d = _prep(mean)
    logvar2d = _prep(log_var)

    blocks_total = _cdiv(rows_padded, block_rows)
    parts = max(1, min(num_parts, blocks_total))
    blocks_per_part = _cdiv(blocks_total, parts)
    needs_mask = (rows_padded % block_rows != 0) or (blocks_total % parts != 0)

    def in_index_map(i, j):
        # Clamp so the last part never DMAs out of bounds; duplicated reads
        # are zeroed by the in-kernel row mask.
        blk = jnp.minimum(i * blocks_per_part + j, blocks_total - 1)
        return (blk, 0)

    kernel = functools.partial(
        _kld_kernel, rows_padded, block_rows, blocks_per_part, needs_mask)

    cost = pl.CostEstimate(
        flops=6 * n,
        transcendentals=n,
        bytes_accessed=(mean.size * jnp.dtype(mean.dtype).itemsize
                        + log_var.size * jnp.dtype(log_var.dtype).itemsize
                        + parts * _LANES * 4),
    )

    partials = pl.pallas_call(
        kernel,
        out_shape=jax.ShapeDtypeStruct((parts, _LANES), jnp.float32),
        grid_spec=pltpu.PrefetchScalarGridSpec(
            num_scalar_prefetch=0,
            grid=(parts, blocks_per_part),
            in_specs=[
                pl.BlockSpec((block_rows, _LANES), in_index_map),
                pl.BlockSpec((block_rows, _LANES), in_index_map),
            ],
            out_specs=pl.BlockSpec((1, _LANES), lambda i, j: (i, 0)),
            scratch_shapes=[pltpu.VMEM((block_rows, _LANES), jnp.float32)],
        ),
        compiler_params=pltpu.CompilerParams(
            dimension_semantics=("parallel", "arbitrary"),
            vmem_limit_bytes=_VMEM_LIMIT_BYTES,
        ),
        cost_estimate=cost,
    )(mean2d, logvar2d)

    # Tiny final combine of per-part partial sums in the wrapper.
    return -0.5 * jnp.sum(partials) / n


def kld_ref(mean, log_var):
    mean = mean.astype(jnp.float32)
    log_var = log_var.astype(jnp.float32)
    return -0.5 * jnp.mean(1.0 + log_var - mean**2 - jnp.exp(log_var))


if __name__ == "__main__":
    key = jax.random.PRNGKey(0)
    cases = [
        ((2, 32), jnp.float32),      # typical VAE latent stats: batch=2, latent=32
        ((100, 6400), jnp.float32),  # multi-block path: part split + tail-only mask
        ((128, 512), jnp.bfloat16),  # bf16 passthrough, in-kernel f32 upcast
    ]
    for shape, dtype in cases:
        key, k1, k2 = jax.random.split(key, 3)
        mean = jax.random.normal(k1, shape, dtype=jnp.float32).astype(dtype)
        log_var = jax.random.normal(k2, shape, dtype=jnp.float32).astype(dtype)

        out = jax.block_until_ready(kld(mean, log_var))
        ref = jax.block_until_ready(kld_ref(mean, log_var))
        assert jnp.allclose(out, ref, rtol=1e-4, atol=1e-5), (shape, dtype, out, ref)

    print("KERNEL_OK")
</pallas_src>

<mosaic_0001>
module attributes {stable_mosaic.version = 11 : i64} {
  func.func @_kld_kernel(%arg0: i32, %arg1: i32, %arg2: memref<8x128xf32, #tpu.memory_space<vmem>>, %arg3: memref<8x128xf32, #tpu.memory_space<vmem>>, %arg4: memref<1x128xf32, #tpu.memory_space<vmem>>, %arg5: memref<8x128xf32, #tpu.memory_space<vmem>>) attributes {dimension_semantics = [#tpu.dimension_semantics<parallel>, #tpu.dimension_semantics<arbitrary>], iteration_bounds = array<i64: 1, 1>, scalar_prefetch = 0 : i64, scratch_operands = 1 : i64, tpu.core_type = #tpu.core_type<tc>, window_params = [{transform_indices = @transform_0, window_bounds = array<i64: 8, 128>}, {transform_indices = @transform_1, window_bounds = array<i64: 8, 128>}, {transform_indices = @transform_2, window_bounds = array<i64: 1, 128>}]} {
    %c0_i32 = arith.constant 0 : i32
    %0 = arith.cmpi eq, %arg1, %c0_i32 : i32
    %1 = arith.extui %0 : i1 to i32
    %c0_i32_0 = arith.constant 0 : i32
    %2 = arith.cmpi ne, %1, %c0_i32_0 : i32
    scf.if %2 {
      %cst_10 = arith.constant 0.000000e+00 : f32
      %17 = vector.broadcast %cst_10 : f32 to vector<8x128xf32>
      %c0_11 = arith.constant 0 : index
      %c0_12 = arith.constant 0 : index
      %18 = vector.load %arg5[%c0_11, %c0_12] : memref<8x128xf32, #tpu.memory_space<vmem>>, vector<8x128xf32>
      tpu.vector_store %arg5[%c0_11, %c0_12], %17 {strides = array<i32>} : memref<8x128xf32, #tpu.memory_space<vmem>>, vector<8x128xf32>,
    } else {
    }
    %c0 = arith.constant 0 : index
    %c0_1 = arith.constant 0 : index
    %3 = vector.load %arg2[%c0, %c0_1] : memref<8x128xf32, #tpu.memory_space<vmem>>, vector<8x128xf32>
    %c0_2 = arith.constant 0 : index
    %c0_3 = arith.constant 0 : index
    %4 = vector.load %arg3[%c0_2, %c0_3] : memref<8x128xf32, #tpu.memory_space<vmem>>, vector<8x128xf32>
    %cst = arith.constant 1.000000e+00 : f32
    %5 = vector.broadcast %cst : f32 to vector<8x128xf32>
    %6 = arith.addf %5, %4 : vector<8x128xf32>
    %7 = arith.mulf %3, %3 : vector<8x128xf32>
    %8 = arith.subf %6, %7 : vector<8x128xf32>
    %9 = math.exp %4 : vector<8x128xf32>
    %10 = arith.subf %8, %9 : vector<8x128xf32>
    %c0_4 = arith.constant 0 : index
    %c0_5 = arith.constant 0 : index
    %11 = vector.load %arg5[%c0_4, %c0_5] : memref<8x128xf32, #tpu.memory_space<vmem>>, vector<8x128xf32>
    %12 = arith.addf %11, %10 : vector<8x128xf32>
    %c0_6 = arith.constant 0 : index
    %c0_7 = arith.constant 0 : index
    %13 = vector.load %arg5[%c0_6, %c0_7] : memref<8x128xf32, #tpu.memory_space<vmem>>, vector<8x128xf32>
    tpu.vector_store %arg5[%c0_6, %c0_7], %12 {strides = array<i32>} : memref<8x128xf32, #tpu.memory_space<vmem>>, vector<8x128xf32>,
    %c0_i32_8 = arith.constant 0 : i32
    %14 = arith.cmpi eq, %arg1, %c0_i32_8 : i32
    %15 = arith.extui %14 : i1 to i32
    %c0_i32_9 = arith.constant 0 : i32
    %16 = arith.cmpi ne, %15, %c0_i32_9 : i32
    scf.if %16 {
      %c0_10 = arith.constant 0 : index
      %c0_11 = arith.constant 0 : index
      %17 = vector.load %arg5[%c0_10, %c0_11] : memref<8x128xf32, #tpu.memory_space<vmem>>, vector<8x128xf32>
      %cst_12 = arith.constant dense<0.000000e+00> : vector<128xf32>
      %18 = vector.multi_reduction <add>, %17, %cst_12 [0] : vector<8x128xf32> to vector<128xf32>
      %19 = vector.shape_cast %18 : vector<128xf32> to vector<1x128xf32>
      %c0_13 = arith.constant 0 : index
      %c0_14 = arith.constant 0 : index
      %20 = vector.load %arg4[%c0_13, %c0_14] : memref<1x128xf32, #tpu.memory_space<vmem>>, vector<1x128xf32>
      tpu.vector_store %arg4[%c0_13, %c0_14], %19 {strides = array<i32>} : memref<1x128xf32, #tpu.memory_space<vmem>>, vector<1x128xf32>,
    } else {
    }
    return
  }
  func.func @transform_0(%arg0: i32, %arg1: i32) -> (i32, i32) {
    %c1_i32 = arith.constant 1 : i32
    %0 = arith.muli %arg0, %c1_i32 : i32
    %1 = arith.addi %0, %arg1 : i32
    %c0_i32 = arith.constant 0 : i32
    %2 = arith.minsi %1, %c0_i32 : i32
    %c0_i32_0 = arith.constant 0 : i32
    %c0_i32_1 = arith.constant 0 : i32
    return %2, %c0_i32_0 : i32, i32
  }
  func.func @transform_1(%arg0: i32, %arg1: i32) -> (i32, i32) {
    %c1_i32 = arith.constant 1 : i32
    %0 = arith.muli %arg0, %c1_i32 : i32
    %1 = arith.addi %0, %arg1 : i32
    %c0_i32 = arith.constant 0 : i32
    %2 = arith.minsi %1, %c0_i32 : i32
    %c0_i32_0 = arith.constant 0 : i32
    %c0_i32_1 = arith.constant 0 : i32
    return %2, %c0_i32_0 : i32, i32
  }
  func.func @transform_2(%arg0: i32, %arg1: i32) -> (i32, i32) {
    %c0_i32 = arith.constant 0 : i32
    %c0_i32_0 = arith.constant 0 : i32
    return %arg0, %c0_i32 : i32, i32
  }
}

</mosaic_0001>

<bundles_post_ra>
// kernel: tpu_custom_call.1
= control target key start
LH: loop header
LB: loop body
LE: loop exit
PB: predicated region body
PF: predicated region fallthrough
CT: control target
= control target key end

     0   :  { %7 = vsyncpa [#allocation4], 0  ;;  %s197_s0 = inlined_call_operand.hbm [shape: f32[8,128], index: 0, kind: input, shape index: {}]   ;;  %s198_s1 = inlined_call_operand.hbm [shape: f32[8,128], index: 1, kind: input, shape index: {}]   ;;  %s199_s2 = inlined_call_operand.hbm [shape: f32[1,128], index: 2, kind: output, shape index: {}]  }
   0x1   :  { %8 = vsyncpa [#allocation7], 0 }
   0x2   :  { %9 = vsyncpa [#allocation5], 0  ;;  %s170_s9 = smov [#allocation3]   ;;  %s171_s11 = smov [#allocation6]  }
   0x3   :  { %s21_s10 = sshll.u32 %s170_s9, 4  ;;  %s36_s12 = sshll.u32 %s171_s11, 4  ;;  %s22_s10 = int_to_ptr.vmem [resolvable:$true] %s21_s10  ;;  %s37_s12 = int_to_ptr.vmem [resolvable:$true] %s36_s12 }
   0x4   :  { %s112_s13 = scalar_lea.vmem %s22_s10, 128  ;;  %p117_p1 = scmp.lt.s32.totalorder %s22_s10, %s22_s10 }
   0x5   :  { %p113_p0 = scmp.ne.s32.totalorder %s22_s10, %s112_s13  ;;  %p118_p2 = scmp.lt.s32.totalorder %s112_s13, %s112_s13 }
   0x7   :  { %p119_p3 = por %p118_p2, %p117_p1 }
   0x9   :  { %p120_p4 = pnand %p119_p3, %p113_p0 }
   0xb   :  { %123 = shalt.err (!%p120_p4)
}
   0xc   :  { %24 = dma.hbm_to_vmem [thread:$0]  %s197_s0, 128, %s22_s10, [#allocation4]  }
   0xd   :  { %s132_s16 = scalar_lea.vmem %s37_s12, 128  ;;  %p137_p6 = scmp.lt.s32.totalorder %s37_s12, %s37_s12 }
   0xe   :  { %p133_p5 = scmp.ne.s32.totalorder %s37_s12, %s132_s16  ;;  %p138_p7 = scmp.lt.s32.totalorder %s132_s16, %s132_s16 }
  0x10   :  { %p139_p8 = por %p138_p7, %p137_p6 }
  0x12   :  { %p140_p9 = pnand %p139_p8, %p133_p5 }
  0x14   :  { %143 = shalt.err (!%p140_p9)
}
  0x15   :  { %39 = dma.hbm_to_vmem [thread:$0]  %s198_s1, 128, %s37_s12, [#allocation7]  }
  0x16   :  { %164 = dma.done.wait [#allocation4], 128  }
  0x17   :  { %165 = vsyncadd [#allocation4], 4294967168 }
  0x18   :  { %166 = dma.done.wait [#allocation7], 128  }
  0x19   :  { %167 = vsyncadd [#allocation7], 4294967168  ;;  %v58_v0 = vld [vmem:[#allocation6] sm:$0xff]  ;;  %v57_v2 = vld [vmem:[#allocation3] sm:$0xff]  ;;  %s172_s0 = smov [#allocation8]  }
  0x1a   :  { %v62_v1 = vmul.f32 1.442695, %v58_v0  ;;  %v59_v3 = vadd.f32 1.0, %v58_v0  ;;  %v60_v4 = vmul.f32 %v57_v2, %v57_v2  ;;  %s85_s19 = sshll.u32 %s172_s0, 4  ;;  %s86_s19 = int_to_ptr.vmem [resolvable:$true] %s85_s19 }
  0x1b   :  { %s144_s1 = scalar_lea.vmem %s86_s19, 16  ;;  %s148_s20 = scalar_lea.vmem %s86_s19, 32 }
  0x1c   :  { %102 = vpow2.f32 %v62_v1  ;;  %v61_v5 = vsub.f32 %v59_v3, %v60_v4  ;;  %p145_p10 = scmp.ne.s32.totalorder %s86_s19, %s144_s1  ;;  %p149_p11 = scmp.lt.s32.totalorder %s86_s19, %s86_s19 }
  0x1d   :  { %p150_p12 = scmp.lt.s32.totalorder %s148_s20, %s144_s1 }
  0x1f   :  { %p151_p13 = por %p150_p12, %p149_p11 }
  0x21   :  { %p152_p0 = pnand %p151_p13, %p145_p10 }
  0x29   :  { %v103_v6 = vpop.eup %102 }
  0x2a   :  { %v64_v7 = vsub.f32 %v61_v5, %v103_v6 }
  0x2c   :  { %v72_v8 = vrot.slane %v64_v7, 4 }
  0x2e   :  { %v73_v9 = vadd.f32 %v72_v8, %v64_v7 }
  0x30   :  { %v74_v10 = vrot.slane %v73_v9, 2 }
  0x32   :  { %v75_v11 = vadd.f32 %v74_v10, %v73_v9 }
  0x34   :  { %v76_v12 = vrot.slane %v75_v11, 1 }
  0x36   :  { %v77_v13 = vadd.f32 %v76_v12, %v75_v11 }
  0x38   :  { %78 = vst [vmem:[#allocation8] sm:$0x1] %v77_v13 }
  0x39   :  { %155 = shalt.err (!%p152_p0)
}
  0x3a   :  { %88 = dma.vmem_to_hbm [thread:$0]  %s86_s19, 16, %s199_s2, [#allocation5]  }
  0x3b   :  { %168 = dma.done.wait [#allocation5], 16  }
  0x3c   :  { %169 = vsyncadd [#allocation5], 4294967280 }
  0x3d   :  { %92 = vsyncpa [#allocation4], 1 }
  0x3e   :  { %93 = vsyncpa [#allocation7], 1 }
  0x3f   :  { %94 = vsyncpa [#allocation5], 1 }

</bundles_post_ra>
